<compile_context>
chip_gen: v7x
topology: tpu7x:2x2x1
jax: 0.10.0
libtpu: 0.0.40
codegen_flags: <defaults>
</compile_context>

<pallas_src>
import functools

import jax
import jax.numpy as jnp
from jax.experimental import pallas as pl
from jax.experimental.pallas import tpu as pltpu


def _round_up(n, m):
    return ((n + m - 1) // m) * m


# ---------------------------------------------------------------------------
# Kernel
# ---------------------------------------------------------------------------
def expert_kernel(x_ref, w1_ref, b1_ref, w2_ref, b2_ref, o_ref):
    # x_ref:  (tile_rows, d_pad) bf16
    # w1_ref: (d_pad, tile_h)    bf16     b1_ref: (1, tile_h) f32
    # w2_ref: (tile_h, d_pad)    bf16     b2_ref: (1, d_pad)  f32
    # o_ref:  (tile_rows, d_pad) f32  — VMEM-resident across the hidden axis.
    h_idx = pl.program_id(1)

    # fc1 chunk + bias + relu (MXU bf16, f32 accumulate; bias/relu ride VPU slots).
    h = jnp.dot(x_ref[...], w1_ref[...], preferred_element_type=jnp.float32)
    h = jnp.maximum(h + b1_ref[...], 0.0).astype(jnp.bfloat16)

    # fc2 partial product, accumulated directly into the resident output tile.
    partial = jnp.dot(h, w2_ref[...], preferred_element_type=jnp.float32)

    @pl.when(h_idx == 0)
    def _first():
        o_ref[...] = partial + b2_ref[...]

    @pl.when(h_idx > 0)
    def _rest():
        o_ref[...] += partial


# ---------------------------------------------------------------------------
# Parameter prep (one-time): transpose to (in, out), pad, cast to bf16.
# ---------------------------------------------------------------------------
def prepare_expert_params(w1, b1, w2, b2):
    """w1: (hidden, model_dim), b1: (hidden,), w2: (model_dim, hidden), b2: (model_dim,)."""
    hidden, model_dim = w1.shape
    d_pad = _round_up(model_dim, 128)
    # Pad hidden to a multiple of 256 (MXU-friendly, and guarantees clean 256/128
    # chunk divisors) — zero padding is numerically inert through relu and fc2.
    h_pad = _round_up(hidden, 256) if hidden > 128 else 128

    w1t = jnp.pad(jnp.asarray(w1).T,
                  ((0, d_pad - model_dim), (0, h_pad - hidden))).astype(jnp.bfloat16)
    w2t = jnp.pad(jnp.asarray(w2).T,
                  ((0, h_pad - hidden), (0, d_pad - model_dim))).astype(jnp.bfloat16)
    b1p = jnp.pad(jnp.asarray(b1), (0, h_pad - hidden)).reshape(1, h_pad).astype(jnp.float32)
    b2p = jnp.pad(jnp.asarray(b2), (0, d_pad - model_dim)).reshape(1, d_pad).astype(jnp.float32)
    return w1t, b1p, w2t, b2p


# ---------------------------------------------------------------------------
# Static tile selection / VMEM accounting
# ---------------------------------------------------------------------------
_VMEM_BUDGET = 40 * 1024 * 1024  # conservative: leaves headroom even on v7x (64 MiB)


def _vmem_bytes(tile_rows, tile_h, d_pad):
    x_buf = 2 * tile_rows * d_pad * 2          # bf16 input tile, double-buffered
    o_buf = 2 * tile_rows * d_pad * 4          # f32 output tile, double-buffered
    w_buf = 2 * 2 * d_pad * tile_h * 2         # w1 + w2 chunks, bf16, double-buffered
    b_buf = 2 * (tile_h + d_pad) * 4 * 2       # biases
    return x_buf + o_buf + w_buf + b_buf


def _select_tiles(rows, d_pad, h_pad, tile_rows_hint, tile_h_hint):
    tile_rows = min(_round_up(tile_rows_hint, 16), max(16, _round_up(rows, 16)))
    # Keep >=2 row tiles when there are enough rows so the "parallel" axis can be
    # sharded across both TensorCores on v7x.
    if rows >= 32 and tile_rows >= rows:
        tile_rows = max(16, _round_up(-(-rows // 2), 16))

    def fits(tr, th):
        return _vmem_bytes(tr, th, d_pad) <= _VMEM_BUDGET

    # Plan A: full weight residency (weights DMA'd once, stay in VMEM for the whole
    # row sweep).  Shrink tile_rows before giving this up.
    if tile_h_hint is None or tile_h_hint >= h_pad:
        tr = tile_rows
        while not fits(tr, h_pad) and tr > 64:
            tr = max(64, tr // 2)
        if fits(tr, h_pad):
            return tr, h_pad

    # Plan B: chunk the hidden dim.  Per-row-tile weight traffic is all of w1+w2
    # regardless of chunk size, so keep tile_rows as large as possible and take the
    # largest MXU-friendly chunk that fits.
    cands = [c for c in (512, 256, 128) if c < h_pad and h_pad % c == 0] or [h_pad]
    if tile_h_hint is not None:
        cands = [c for c in cands if c <= tile_h_hint] or cands[-1:]
    tr = tile_rows
    while True:
        for th in cands:
            if fits(tr, th):
                return tr, th
        if tr <= 64:
            return tr, cands[-1]   # best effort
        tr = max(64, tr // 2)


# ---------------------------------------------------------------------------
# Forward wrapper
# ---------------------------------------------------------------------------
@functools.partial(jax.jit, static_argnames=("tile_rows", "tile_h"))
def expert_forward(x, w1t, b1p, w2t, b2p, *, tile_rows=512, tile_h=None):
    """x: (batch, num_tokens, model_dim) f32; weights from prepare_expert_params."""
    batch, num_tokens, model_dim = x.shape
    d_pad, h_pad = w1t.shape
    rows = batch * num_tokens

    tr, th = _select_tiles(rows, d_pad, h_pad, tile_rows, tile_h)
    rows_pad = _round_up(rows, tr)

    x2d = x.reshape(rows, model_dim)
    if rows_pad != rows or d_pad != model_dim:
        x2d = jnp.pad(x2d, ((0, rows_pad - rows), (0, d_pad - model_dim)))
    x2d = x2d.astype(jnp.bfloat16)

    grid = (rows_pad // tr, h_pad // th)
    vmem_limit = int(min(max(_vmem_bytes(tr, th, d_pad) + (8 << 20), 16 << 20), 64 << 20))

    out2d = pl.pallas_call(
        expert_kernel,
        out_shape=jax.ShapeDtypeStruct((rows_pad, d_pad), jnp.float32),
        grid_spec=pltpu.PrefetchScalarGridSpec(
            num_scalar_prefetch=0,
            grid=grid,
            in_specs=[
                pl.BlockSpec((tr, d_pad), lambda i, h: (i, 0)),   # x row tile
                pl.BlockSpec((d_pad, th), lambda i, h: (0, h)),   # w1^T chunk
                pl.BlockSpec((1, th),     lambda i, h: (0, h)),   # b1 chunk
                pl.BlockSpec((th, d_pad), lambda i, h: (h, 0)),   # w2^T chunk
                pl.BlockSpec((1, d_pad),  lambda i, h: (0, 0)),   # b2
            ],
            out_specs=pl.BlockSpec((tr, d_pad), lambda i, h: (i, 0)),
        ),
        compiler_params=pltpu.CompilerParams(
            dimension_semantics=("parallel", "arbitrary"),
            vmem_limit_bytes=vmem_limit,
        ),
    )(x2d, w1t, b1p, w2t, b2p)

    if rows_pad != rows or d_pad != model_dim:
        out2d = out2d[:rows, :model_dim]
    return out2d.reshape(batch, num_tokens, model_dim)


# ---------------------------------------------------------------------------
# Pure-JAX reference mirroring the kernel's numerics (bf16 inputs, f32 accum).
# ---------------------------------------------------------------------------
def _reference(x, w1, b1, w2, b2):
    xb = x.astype(jnp.bfloat16).astype(jnp.float32)
    w1b = w1.astype(jnp.bfloat16).astype(jnp.float32)
    w2b = w2.astype(jnp.bfloat16).astype(jnp.float32)
    h = jnp.maximum(xb @ w1b.T + b1, 0.0)
    hb = h.astype(jnp.bfloat16).astype(jnp.float32)
    return hb @ w2b.T + b2


def _make_linear(key, out_dim, in_dim):
    kw, kb = jax.random.split(key)
    bound = 1.0 / jnp.sqrt(in_dim)
    w = jax.random.uniform(kw, (out_dim, in_dim), jnp.float32, -bound, bound)
    b = jax.random.uniform(kb, (out_dim,), jnp.float32, -bound, bound)
    return w, b


if __name__ == "__main__":
    key = jax.random.PRNGKey(0)

    # --- Test 1: small shapes consistent with the module's forward ---
    batch_size, num_tokens, model_dim, hidden_size = 2, 8, 32, 64
    kx, k1, k2 = jax.random.split(key, 3)
    x = jax.random.normal(kx, (batch_size, num_tokens, model_dim), dtype=jnp.float32)
    w1, b1 = _make_linear(k1, hidden_size, model_dim)
    w2, b2 = _make_linear(k2, model_dim, hidden_size)

    params = prepare_expert_params(w1, b1, w2, b2)
    out = jax.block_until_ready(expert_forward(x, *params))
    ref = _reference(x, w1, b1, w2, b2)
    assert out.shape == (batch_size, num_tokens, model_dim)
    assert jnp.allclose(out, ref, atol=1e-2, rtol=1e-2), float(jnp.max(jnp.abs(out - ref)))

    # --- Test 2: ragged shapes (row / dim / hidden padding paths) ---
    bR, tR, dR, hR = 2, 70, 48, 300
    kxr, k1r, k2r = jax.random.split(jax.random.PRNGKey(1), 3)
    x_r = jax.random.normal(kxr, (bR, tR, dR), dtype=jnp.float32)
    w1_r, b1_r = _make_linear(k1r, hR, dR)
    w2_r, b2_r = _make_linear(k2r, dR, hR)

    params_r = prepare_expert_params(w1_r, b1_r, w2_r, b2_r)
    out_r = jax.block_until_ready(expert_forward(x_r, *params_r))
    ref_r = _reference(x_r, w1_r, b1_r, w2_r, b2_r)
    assert out_r.shape == (bR, tR, dR)
    assert jnp.allclose(out_r, ref_r, atol=1e-2, rtol=1e-2), float(
        jnp.max(jnp.abs(out_r - ref_r)))

    # --- Test 3: force hidden-dim chunking to exercise the o_ref accumulation path ---
    bC, tC, dC, hC = 1, 64, 128, 512
    kxc, k1c, k2c = jax.random.split(jax.random.PRNGKey(2), 3)
    x_c = jax.random.normal(kxc, (bC, tC, dC), dtype=jnp.float32)
    w1_c, b1_c = _make_linear(k1c, hC, dC)
    w2_c, b2_c = _make_linear(k2c, dC, hC)

    params_c = prepare_expert_params(w1_c, b1_c, w2_c, b2_c)
    out_c = jax.block_until_ready(expert_forward(x_c, *params_c, tile_h=256))
    ref_c = _reference(x_c, w1_c, b1_c, w2_c, b2_c)
    assert out_c.shape == (bC, tC, dC)
    assert jnp.allclose(out_c, ref_c, atol=2e-2, rtol=2e-2), float(
        jnp.max(jnp.abs(out_c - ref_c)))

    print("KERNEL_OK")
</pallas_src>

<mosaic_0001>
module attributes {stable_mosaic.version = 11 : i64} {
  func.func @expert_kernel(%arg0: i32, %arg1: i32, %arg2: memref<16x128xbf16, #tpu.memory_space<vmem>>, %arg3: memref<128x128xbf16, #tpu.memory_space<vmem>>, %arg4: memref<1x128xf32, #tpu.memory_space<vmem>>, %arg5: memref<128x128xbf16, #tpu.memory_space<vmem>>, %arg6: memref<1x128xf32, #tpu.memory_space<vmem>>, %arg7: memref<16x128xf32, #tpu.memory_space<vmem>>) attributes {dimension_semantics = [#tpu.dimension_semantics<parallel>, #tpu.dimension_semantics<arbitrary>], iteration_bounds = array<i64: 1, 1>, scalar_prefetch = 0 : i64, scratch_operands = 0 : i64, tpu.core_type = #tpu.core_type<tc>, window_params = [{transform_indices = @transform_0, window_bounds = array<i64: 16, 128>}, {transform_indices = @transform_1, window_bounds = array<i64: 128, 128>}, {transform_indices = @transform_2, window_bounds = array<i64: 1, 128>}, {transform_indices = @transform_3, window_bounds = array<i64: 128, 128>}, {pipeline_mode = #tpu.pipeline_mode<synchronous>, transform_indices = @transform_4, window_bounds = array<i64: 1, 128>}, {transform_indices = @transform_5, window_bounds = array<i64: 16, 128>}]} {
    %c0 = arith.constant 0 : index
    %c0_0 = arith.constant 0 : index
    %0 = vector.load %arg2[%c0, %c0_0] : memref<16x128xbf16, #tpu.memory_space<vmem>>, vector<16x128xbf16>
    %c0_1 = arith.constant 0 : index
    %c0_2 = arith.constant 0 : index
    %1 = vector.load %arg3[%c0_1, %c0_2] : memref<128x128xbf16, #tpu.memory_space<vmem>>, vector<128x128xbf16>
    %cst = arith.constant dense<0.000000e+00> : vector<16x128xf32>
    %2 = tpu.matmul %0, %1, %cst {dimension_numbers = #tpu.dot_dimension_numbers<[1], [0], [0], [1], [0, 0, 1, 1], [], []>} : vector<16x128xbf16>, vector<128x128xbf16>, vector<16x128xf32> -> vector<16x128xf32>
    %c0_3 = arith.constant 0 : index
    %c0_4 = arith.constant 0 : index
    %3 = vector.load %arg4[%c0_3, %c0_4] : memref<1x128xf32, #tpu.memory_space<vmem>>, vector<1x128xf32>
    %4 = vector.broadcast %3 : vector<1x128xf32> to vector<16x128xf32>
    %5 = arith.addf %2, %4 : vector<16x128xf32>
    %cst_5 = arith.constant 0.000000e+00 : f32
    %6 = vector.broadcast %cst_5 : f32 to vector<16x128xf32>
    %7 = arith.maximumf %5, %6 : vector<16x128xf32>
    %8 = arith.truncf %7 : vector<16x128xf32> to vector<16x128xbf16>
    %c0_6 = arith.constant 0 : index
    %c0_7 = arith.constant 0 : index
    %9 = vector.load %arg5[%c0_6, %c0_7] : memref<128x128xbf16, #tpu.memory_space<vmem>>, vector<128x128xbf16>
    %cst_8 = arith.constant dense<0.000000e+00> : vector<16x128xf32>
    %10 = tpu.matmul %8, %9, %cst_8 {dimension_numbers = #tpu.dot_dimension_numbers<[1], [0], [0], [1], [0, 0, 1, 1], [], []>} : vector<16x128xbf16>, vector<128x128xbf16>, vector<16x128xf32> -> vector<16x128xf32>
    %c0_i32 = arith.constant 0 : i32
    %11 = arith.cmpi eq, %arg1, %c0_i32 : i32
    %12 = arith.extui %11 : i1 to i32
    %c0_i32_9 = arith.constant 0 : i32
    %13 = arith.cmpi ne, %12, %c0_i32_9 : i32
    scf.if %13 {
      %c0_12 = arith.constant 0 : index
      %c0_13 = arith.constant 0 : index
      %17 = vector.load %arg6[%c0_12, %c0_13] : memref<1x128xf32, #tpu.memory_space<vmem>>, vector<1x128xf32>
      %18 = vector.broadcast %17 : vector<1x128xf32> to vector<16x128xf32>
      %19 = arith.addf %10, %18 : vector<16x128xf32>
      %c0_14 = arith.constant 0 : index
      %c0_15 = arith.constant 0 : index
      %20 = vector.load %arg7[%c0_14, %c0_15] : memref<16x128xf32, #tpu.memory_space<vmem>>, vector<16x128xf32>
      tpu.vector_store %arg7[%c0_14, %c0_15], %19 {strides = array<i32>} : memref<16x128xf32, #tpu.memory_space<vmem>>, vector<16x128xf32>,
    } else {
    }
    %c0_i32_10 = arith.constant 0 : i32
    %14 = arith.cmpi sgt, %arg1, %c0_i32_10 : i32
    %15 = arith.extui %14 : i1 to i32
    %c0_i32_11 = arith.constant 0 : i32
    %16 = arith.cmpi ne, %15, %c0_i32_11 : i32
    scf.if %16 {
      %c0_12 = arith.constant 0 : index
      %c0_13 = arith.constant 0 : index
      %17 = vector.load %arg7[%c0_12, %c0_13] : memref<16x128xf32, #tpu.memory_space<vmem>>, vector<16x128xf32>
      %18 = arith.addf %17, %10 : vector<16x128xf32>
      %c0_14 = arith.constant 0 : index
      %c0_15 = arith.constant 0 : index
      %19 = vector.load %arg7[%c0_14, %c0_15] : memref<16x128xf32, #tpu.memory_space<vmem>>, vector<16x128xf32>
      tpu.vector_store %arg7[%c0_14, %c0_15], %18 {strides = array<i32>} : memref<16x128xf32, #tpu.memory_space<vmem>>, vector<16x128xf32>,
    } else {
    }
    return
  }
  func.func @transform_0(%arg0: i32, %arg1: i32) -> (i32, i32) {
    %c0_i32 = arith.constant 0 : i32
    %c0_i32_0 = arith.constant 0 : i32
    return %arg0, %c0_i32 : i32, i32
  }
  func.func @transform_1(%arg0: i32, %arg1: i32) -> (i32, i32) {
    %c0_i32 = arith.constant 0 : i32
    %c0_i32_0 = arith.constant 0 : i32
    return %c0_i32, %arg1 : i32, i32
  }
  func.func @transform_2(%arg0: i32, %arg1: i32) -> (i32, i32) {
    %c0_i32 = arith.constant 0 : i32
    %c0_i32_0 = arith.constant 0 : i32
    return %c0_i32, %arg1 : i32, i32
  }
  func.func @transform_3(%arg0: i32, %arg1: i32) -> (i32, i32) {
    %c0_i32 = arith.constant 0 : i32
    %c0_i32_0 = arith.constant 0 : i32
    return %arg1, %c0_i32 : i32, i32
  }
  func.func @transform_4(%arg0: i32, %arg1: i32) -> (i32, i32) {
    %c0_i32 = arith.constant 0 : i32
    %c0_i32_0 = arith.constant 0 : i32
    %c0_i32_1 = arith.constant 0 : i32
    return %c0_i32, %c0_i32_0 : i32, i32
  }
  func.func @transform_5(%arg0: i32, %arg1: i32) -> (i32, i32) {
    %c0_i32 = arith.constant 0 : i32
    %c0_i32_0 = arith.constant 0 : i32
    return %arg0, %c0_i32 : i32, i32
  }
}

</mosaic_0001>

<bundles_post_ra>
// kernel: expert_forward.1
= control target key start
LH: loop header
LB: loop body
LE: loop exit
PB: predicated region body
PF: predicated region fallthrough
CT: control target
= control target key end

     0   :  { %10 = vsyncpa [#allocation3], 0  ;;  %s531_s0 = inlined_call_operand.vmem [shape: bf16[16,128], index: 0, kind: input, shape index: {}]   ;;  %s532_s1 = inlined_call_operand.hbm [shape: bf16[128,128], index: 1, kind: input, shape index: {}]   ;;  %s533_s2 = inlined_call_operand.vmem [shape: f32[1,128], index: 2, kind: input, shape index: {}]   ;;  %s534_s3 = inlined_call_operand.hbm [shape: bf16[128,128], index: 3, kind: input, shape index: {}]   ;;  %s535_s4 = inlined_call_operand.vmem [shape: f32[1,128], index: 4, kind: input, shape index: {}]   ;;  %s536_s5 = inlined_call_operand.vmem [shape: f32[16,128], index: 5, kind: output, shape index: {}]  }
   0x1   :  { %11 = vsyncpa [#allocation5], 0  ;;  %s456_s18 = smov [#allocation2]   ;;  %s408_s22 = scalar_lea.hbm %s532_s1, 1024 }
   0x2   :  { %s19_s19 = sshll.u32 %s456_s18, 4  ;;  %p409_p0 = scmp.ne.s32.totalorder %s532_s1, %s408_s22  ;;  %s20_s19 = int_to_ptr.vmem [resolvable:$true] %s19_s19 }
   0x3   :  { %p412_p1 = scmp.lt.u32.totalorder %s408_s22, %s532_s1 }
   0x5   :  { %p414_p2 = pnand %p412_p1, %p409_p0 }
   0x7   :  { %417 = shalt.err (!%p414_p2)
}
   0x8   :  { %s418_s27 = scalar_lea.vmem %s20_s19, 1024  ;;  %p423_p4 = scmp.lt.s32.totalorder %s20_s19, %s20_s19 }
   0x9   :  { %p419_p3 = scmp.ne.s32.totalorder %s20_s19, %s418_s27  ;;  %p424_p5 = scmp.lt.s32.totalorder %s418_s27, %s418_s27 }
   0xb   :  { %p425_p6 = por %p424_p5, %p423_p4 }
   0xd   :  { %p426_p7 = pnand %p425_p6, %p419_p3 }
   0xf   :  { %429 = shalt.err (!%p426_p7)
}
  0x10   :  { %s457_s28 = smov 64   ;;  %s458_s29 = smov 4  }
  0x11   :  { %25 = dma.hbm_to_vmem [thread:$0]  %s532_s1, 1024, %s20_s19, [#allocation3], %s457_s28, %s457_s28, %s458_s29  }
  0x12   :  { %s459_s7 = smov [#allocation4]   ;;  %s430_s11 = scalar_lea.hbm %s534_s3, 1024 }
  0x13   :  { %s33_s8 = sshll.u32 %s459_s7, 4  ;;  %p431_p8 = scmp.ne.s32.totalorder %s534_s3, %s430_s11  ;;  %s34_s8 = int_to_ptr.vmem [resolvable:$true] %s33_s8 }
  0x14   :  { %p434_p9 = scmp.lt.u32.totalorder %s430_s11, %s534_s3 }
  0x16   :  { %p436_p10 = pnand %p434_p9, %p431_p8 }
  0x18   :  { %439 = shalt.err (!%p436_p10)
}
  0x19   :  { %s440_s16 = scalar_lea.vmem %s34_s8, 1024  ;;  %p445_p12 = scmp.lt.s32.totalorder %s34_s8, %s34_s8 }
  0x1a   :  { %p441_p11 = scmp.ne.s32.totalorder %s34_s8, %s440_s16  ;;  %p446_p13 = scmp.lt.s32.totalorder %s440_s16, %s440_s16 }
  0x1c   :  { %p447_p0 = por %p446_p13, %p445_p12 }
  0x1e   :  { %p448_p1 = pnand %p447_p0, %p441_p11 }
  0x20   :  { %451 = shalt.err (!%p448_p1)
}
  0x21   :  { %39 = dma.hbm_to_vmem [thread:$0]  %s534_s3, 1024, %s34_s8, [#allocation5], %s457_s28, %s457_s28, %s458_s29  }
  0x22   :  { %452 = dma.done.wait [#allocation3], 1024  }
  0x23   :  { %453 = vsyncadd [#allocation3], 4294966272 }
  0x24   :  { %454 = dma.done.wait [#allocation5], 1024  }
  0x25   :  { %455 = vsyncadd [#allocation5], 4294966272  ;;  %v460_v0 = vmov 0.0   ;;  %vm461_vm0 = vmmov 0   ;;  %v391_v1 = vld [vmem:[#allocation2] sm:$0xff]   ;;  %v392_v2 = vld [vmem:[#allocation2 + $0x8] sm:$0xff]  }
  0x26   :  { %345 = vmatprep.subr.bf16.mxu0 %v460_v0  ;;  %361 = vmatprep.mubr.msk.bf16.mxu0 %vm461_vm0, %v460_v0  ;;  %v393_v3 = vld [vmem:[#allocation2 + $0x10] sm:$0xff]   ;;  %v400_v4 = vld [vmem:[#allocation4] sm:$0xff]   ;;  %v394_v5 = vld [vmem:[#allocation2 + $0x18] sm:$0xff]  }
  0x27   :  { %365 = vmatprep.subr.bf16.mxu1 %v460_v0  ;;  %381 = vmatprep.mubr.msk.bf16.mxu1 %vm461_vm0, %v460_v0  ;;  %v401_v6 = vld [vmem:[#allocation4 + $0x8] sm:$0xff]   ;;  %v395_v7 = vld [vmem:[#allocation2 + $0x20] sm:$0xff]   ;;  %v402_v8 = vld [vmem:[#allocation4 + $0x10] sm:$0xff]  }
  0x28   :  { %346 = vmatpush3.bf16.msra.mxu0 %v391_v1  ;;  %366 = vmatpush3.bf16.msra.mxu1 %v400_v4  ;;  %v396_v9 = vld [vmem:[#allocation2 + $0x28] sm:$0xff]   ;;  %v403_v10 = vld [vmem:[#allocation4 + $0x18] sm:$0xff]   ;;  %v397_v11 = vld [vmem:[#allocation2 + $0x30] sm:$0xff]  }
  0x29   :  { %347 = vmatprep.subr.bf16.mxu0 %v460_v0  ;;  %367 = vmatprep.subr.bf16.mxu1 %v460_v0  ;;  %v404_v12 = vld [vmem:[#allocation4 + $0x20] sm:$0xff]   ;;  %v398_v13 = vld [vmem:[#allocation2 + $0x38] sm:$0xff]   ;;  %v405_v14 = vld [vmem:[#allocation4 + $0x28] sm:$0xff]  }
  0x2a   :  { %v399_v15 = vld [vmem:[%s531_s0] sm:$0xff]   ;;  %v406_v16 = vld [vmem:[#allocation4 + $0x30] sm:$0xff]   ;;  %v407_v17 = vld [vmem:[#allocation4 + $0x38] sm:$0xff]  }
  0x2b   :  { %v308_v18 = vld [vmem:[%s533_s2] ss:$0 sm:$0xff] }
  0x2c   :  { %348 = vmatpush3.bf16.msra.mxu0 %v392_v2  ;;  %368 = vmatpush3.bf16.msra.mxu1 %v401_v6  ;;  %v326_v28 = vld [vmem:[%s535_s4] ss:$0 sm:$0xff] }
  0x2d   :  { %349 = vmatprep.subr.bf16.mxu0 %v460_v0  ;;  %369 = vmatprep.subr.bf16.mxu1 %v460_v0 }
  0x30   :  { %350 = vmatpush3.bf16.msra.mxu0 %v393_v3  ;;  %370 = vmatpush3.bf16.msra.mxu1 %v402_v8 }
  0x31   :  { %351 = vmatprep.subr.bf16.mxu0 %v460_v0  ;;  %371 = vmatprep.subr.bf16.mxu1 %v460_v0 }
  0x34   :  { %352 = vmatpush3.bf16.msra.mxu0 %v394_v5  ;;  %372 = vmatpush3.bf16.msra.mxu1 %v403_v10 }
  0x35   :  { %353 = vmatprep.subr.bf16.mxu0 %v460_v0  ;;  %373 = vmatprep.subr.bf16.mxu1 %v460_v0 }
  0x38   :  { %354 = vmatpush3.bf16.msra.mxu0 %v395_v7  ;;  %374 = vmatpush3.bf16.msra.mxu1 %v404_v12 }
  0x39   :  { %355 = vmatprep.subr.bf16.mxu0 %v460_v0  ;;  %375 = vmatprep.subr.bf16.mxu1 %v460_v0 }
  0x3c   :  { %356 = vmatpush3.bf16.msra.mxu0 %v396_v9  ;;  %376 = vmatpush3.bf16.msra.mxu1 %v405_v14 }
  0x3d   :  { %357 = vmatprep.subr.bf16.mxu0 %v460_v0  ;;  %377 = vmatprep.subr.bf16.mxu1 %v460_v0 }
  0x40   :  { %358 = vmatpush3.bf16.msra.mxu0 %v397_v11  ;;  %378 = vmatpush3.bf16.msra.mxu1 %v406_v16 }
  0x41   :  { %359 = vmatprep.subr.bf16.mxu0 %v460_v0  ;;  %379 = vmatprep.subr.bf16.mxu1 %v460_v0 }
  0x44   :  { %360 = vmatpush3.bf16.msra.mxu0 %v398_v13  ;;  %380 = vmatpush3.bf16.msra.mxu1 %v407_v17 }
  0x47   :  { %362 = vmatmul.mubr.bf16.vlgmr.msra.gmra.mrb[0].mxu0 %v399_v15 }
 0x11a   :  { %v162_v19 = vpop.f32.mrb[0].mxu0 }
 0x11b   :  { %v163_v20 = vadd.f32 %v308_v18, %v162_v19  ;;  %v363_v21 = vpop.f32.mrb[1].mxu0 }
 0x11c   :  { %v165_v22 = vpop.f32.mrb[2].mxu0 }
 0x11d   :  { %v166_v23 = vadd.f32 %v308_v18, %v165_v22  ;;  %v364_v24 = vpop.f32.mrb[3].mxu0  ;;  %v169_v25 = vmax.f32 %v163_v20, 0.0 }
 0x11f   :  { %v170_v26 = vmax.f32 %v166_v23, 0.0 }
 0x121   :  { %v171_v27 = vpack.c.bf16 %v170_v26, %v169_v25 }
 0x123   :  { %382 = vmatmul.mubr.bf16.vlgmr.msra.gmra.mrb[0].mxu1 %v171_v27 }
 0x1f6   :  { %v270_v29 = vpop.f32.mrb[0].mxu1 }
 0x1f7   :  { %v288_v30 = vadd.f32 %v326_v28, %v270_v29  ;;  %v383_v31 = vpop.f32.mrb[1].mxu1 }
 0x1f8   :  { %v273_v32 = vpop.f32.mrb[2].mxu1 }
 0x1f9   :  { %290 = vst [vmem:[%s536_s5] sm:$0xff] %v288_v30  ;;  %v289_v33 = vadd.f32 %v326_v28, %v273_v32  ;;  %v384_v34 = vpop.f32.mrb[3].mxu1 }
 0x1fb   :  { %291 = vst [vmem:[%s536_s5 + $0x8] sm:$0xff] %v289_v33 }
 0x1fc   :  { %306 = vsyncpa [#allocation3], 1 }
 0x1fd   :  { %307 = vsyncpa [#allocation5], 1 }

</bundles_post_ra>
